<compile_context>
chip_gen: v5e
topology: v5e:2x2
jax: 0.10.0
libtpu: 0.0.40
codegen_flags: <defaults>
</compile_context>

<pallas_src>
import functools

import jax
import jax.numpy as jnp
from jax.experimental import pallas as pl
from jax.experimental.pallas import tpu as pltpu


def _round_up(x, m):
    return ((x + m - 1) // m) * m


# ---------------------------------------------------------------------------
# Pallas kernel: full causal-LM forward for one block of sequences.
#   x_ref    : (b_blk * s_pad, H)  bf16   flattened token embeddings
#   mask_ref : (b_blk, 1, s_pad)   f32    key mask per sequence
#   out_ref  : (b_blk * s_pad, Vp) f32    lane-dense logits (Vp = 128-padded)
# ---------------------------------------------------------------------------
def _lm_kernel(x_ref, mask_ref,
               wq_ref, wk_ref, wv_ref, wo_ref,
               wup_ref, wdn_ref,
               g1_ref, b1_ref, g2_ref, b2_ref,
               wlm_ref,
               out_ref, ctx_sc, *, b_blk, s_pad):
    x_bf = x_ref[...]                         # (rows, H) bf16 (MXU operand)
    x = x_bf.astype(jnp.float32)              # f32 residual stream (VPU-safe on v5e)
    rows, H = x.shape
    scale = 1.0 / (float(H) ** 0.5)

    def layernorm(h, g_ref, b_ref):
        g = g_ref[...].astype(jnp.float32)    # tiny (1,H) params
        b = b_ref[...].astype(jnp.float32)
        mu = jnp.mean(h, axis=-1, keepdims=True)
        var = jnp.mean((h - mu) ** 2, axis=-1, keepdims=True)
        return (h - mu) * jax.lax.rsqrt(var + 1e-5) * g + b

    # --- self-attention block --------------------------------------------
    h = layernorm(x, g1_ref, b1_ref).astype(jnp.bfloat16)      # bf16 MXU operand
    q = jnp.dot(h, wq_ref[...], preferred_element_type=jnp.float32) * scale
    k = jnp.dot(h, wk_ref[...], preferred_element_type=jnp.float32)
    v = jnp.dot(h, wv_ref[...], preferred_element_type=jnp.float32)
    q_bf = q.astype(jnp.bfloat16)
    k_bf = k.astype(jnp.bfloat16)
    v_bf = v.astype(jnp.bfloat16)

    ri = jax.lax.broadcasted_iota(jnp.int32, (s_pad, s_pad), 0)
    ci = jax.lax.broadcasted_iota(jnp.int32, (s_pad, s_pad), 1)
    causal = ci <= ri                                           # (s_pad, s_pad)

    # Per-sequence attention scores (static, sublane-aligned row slices).
    for b in range(b_blk):
        r0 = b * s_pad
        key_ok = mask_ref[b] > 0.5                              # (1, s_pad)
        allowed = jnp.logical_and(causal, key_ok)               # (s_pad, s_pad)
        s = jax.lax.dot_general(
            q_bf[r0:r0 + s_pad, :], k_bf[r0:r0 + s_pad, :],
            dimension_numbers=(((1,), (1,)), ((), ())),
            preferred_element_type=jnp.float32)                 # (s_pad, s_pad)
        s = jnp.where(allowed, s, -1e30)
        s = s - jnp.max(s, axis=-1, keepdims=True)
        p = jnp.exp(s)
        p = p * pl.reciprocal(jnp.sum(p, axis=-1, keepdims=True), approx=True)
        ctx_sc[r0:r0 + s_pad, :] = jnp.dot(
            p.astype(jnp.bfloat16), v_bf[r0:r0 + s_pad, :],
            preferred_element_type=jnp.float32)

    x = x + jnp.dot(ctx_sc[...].astype(jnp.bfloat16), wo_ref[...],
                    preferred_element_type=jnp.float32)

    # --- MLP block ----------------------------------------------------------
    h = layernorm(x, g2_ref, b2_ref).astype(jnp.bfloat16)
    up = jnp.dot(h, wup_ref[...], preferred_element_type=jnp.float32)
    up = jax.nn.gelu(up, approximate=True)   # tanh GELU (HF variant may differ)
    x = x + jnp.dot(up.astype(jnp.bfloat16), wdn_ref[...],
                    preferred_element_type=jnp.float32)

    # --- LM head (lane-dense, Vp = multiple of 128) -------------------------
    out_ref[...] = jnp.dot(x.astype(jnp.bfloat16), wlm_ref[...],
                           preferred_element_type=jnp.float32).astype(out_ref.dtype)


# ---------------------------------------------------------------------------
# Wrapper: (B, S, H) embeds + (B, S) mask -> (B, S, V) f32 logits.
# ---------------------------------------------------------------------------
def lm_forward(inputs_embeds, attention_mask, params):
    B, S, H = inputs_embeds.shape
    V = params["embed"].shape[0]
    wlm = params["w_lm_p"]
    Vp = wlm.shape[1]
    F = params["w_up"].shape[1]

    # Pad seq length to a multiple of 16 so rows stay (sub)lane-tiling aligned
    # when the batch is folded into the matmul M dimension.
    Sp = _round_up(S, 16)
    if Sp != S:
        inputs_embeds = jnp.pad(inputs_embeds, ((0, 0), (0, Sp - S), (0, 0)))
        attention_mask = jnp.pad(attention_mask, ((0, 0), (0, Sp - S)))

    # Batch-block grid: >=2 parallel steps when possible (v7x megacore),
    # otherwise a single step folding the whole batch into M.
    nb = 2 if (B % 2 == 0 and B >= 4) else 1
    Bb = B // nb
    rows_blk = Bb * Sp

    x2d = inputs_embeds.reshape(B * Sp, H).astype(jnp.bfloat16)
    mask3 = attention_mask.astype(jnp.float32).reshape(B, 1, Sp)

    kernel = functools.partial(_lm_kernel, b_blk=Bb, s_pad=Sp)

    rows_total = B * Sp
    flops = int(2 * rows_total * H * H * 4            # q, k, v, o projections
                + 2 * B * Sp * Sp * H * 2             # scores + p@v
                + 2 * rows_total * H * F * 2          # mlp up + down
                + 2 * rows_total * H * Vp)            # lm head
    transcendentals = int(B * Sp * Sp + rows_total * F + rows_total)
    weight_bytes = 2 * (4 * H * H + 2 * H * F + 4 * H + H * Vp)
    bytes_accessed = int(x2d.size * 2 + mask3.size * 4
                         + nb * weight_bytes + rows_total * Vp * 4)

    full2 = lambda i: (0, 0)
    grid_spec = pltpu.PrefetchScalarGridSpec(
        num_scalar_prefetch=0,
        grid=(nb,),
        in_specs=[
            pl.BlockSpec((rows_blk, H), lambda i: (i, 0)),   # embeddings (flattened rows)
            pl.BlockSpec((Bb, 1, Sp), lambda i: (i, 0, 0)),  # key mask
            pl.BlockSpec((H, H), full2),                     # wq
            pl.BlockSpec((H, H), full2),                     # wk
            pl.BlockSpec((H, H), full2),                     # wv
            pl.BlockSpec((H, H), full2),                     # wo
            pl.BlockSpec((H, F), full2),                     # w_up
            pl.BlockSpec((F, H), full2),                     # w_down
            pl.BlockSpec((1, H), full2),                     # ln1 gamma
            pl.BlockSpec((1, H), full2),                     # ln1 beta
            pl.BlockSpec((1, H), full2),                     # ln2 gamma
            pl.BlockSpec((1, H), full2),                     # ln2 beta
            pl.BlockSpec((H, Vp), full2),                    # w_lm (128-padded)
        ],
        out_specs=pl.BlockSpec((rows_blk, Vp), lambda i: (i, 0)),
        scratch_shapes=[pltpu.VMEM((rows_blk, H), jnp.float32)],
    )

    logits2d = pl.pallas_call(
        kernel,
        out_shape=jax.ShapeDtypeStruct((rows_total, Vp), jnp.float32),
        grid_spec=grid_spec,
        compiler_params=pltpu.CompilerParams(
            dimension_semantics=("parallel",)),
        cost_estimate=pl.CostEstimate(flops=flops,
                                      transcendentals=transcendentals,
                                      bytes_accessed=bytes_accessed),
    )(x2d, mask3,
      params["w_q"], params["w_k"], params["w_v"], params["w_o"],
      params["w_up"], params["w_down"],
      params["ln1_g"], params["ln1_b"], params["ln2_g"], params["ln2_b"],
      params["w_lm_p"])

    return logits2d.reshape(B, Sp, Vp)[:, :S, :V]


# ---------------------------------------------------------------------------
# ActorForTrigger.forward equivalent (jitted; single pallas_call per forward).
# ---------------------------------------------------------------------------
@functools.partial(jax.jit,
                   static_argnames=("insert_pos", "assuming_trigger_num",
                                    "output_clean_logits"))
def actor_for_trigger_forward(params, input_ids, attention_mask,
                              insert_pos=2, assuming_trigger_num=6,
                              output_clean_logits=False):
    B, S = input_ids.shape
    T, P = assuming_trigger_num, insert_pos

    embeds = jnp.take(params["embed"], input_ids, axis=0)          # (B, S, H) bf16
    H = embeds.shape[-1]
    mask = attention_mask.astype(jnp.float32)

    # insert simulating triggers into embeddings / mask at insert_pos
    trig = jnp.broadcast_to(params["triggers"][None].astype(embeds.dtype),
                            (B, T, H))
    trig_embeds = jnp.concatenate([embeds[:, :P], trig, embeds[:, P:]], axis=1)
    trig_mask = jnp.concatenate(
        [mask[:, :P], jnp.ones((B, T), mask.dtype), mask[:, P:]], axis=1)

    if output_clean_logits:
        # Merge clean + triggered passes into ONE kernel launch: pad the clean
        # sequences to S+T with masked-out positions and stack along batch.
        pad_e = jnp.zeros((B, T, H), embeds.dtype)
        pad_m = jnp.zeros((B, T), mask.dtype)
        all_embeds = jnp.concatenate(
            [jnp.concatenate([embeds, pad_e], axis=1), trig_embeds], axis=0)
        all_mask = jnp.concatenate(
            [jnp.concatenate([mask, pad_m], axis=1), trig_mask], axis=0)
        all_logits = lm_forward(all_embeds, all_mask, params)      # (2B, S+T, V)
        clean_logits = all_logits[:B, :S, :]
        tl = all_logits[B:]
        logits = jnp.concatenate([tl[:, :P], tl[:, P + T:]], axis=1)
        return jnp.concatenate([clean_logits, logits], axis=0)

    # clean logits are unused when output_clean_logits=False -> skip that pass
    tl = lm_forward(trig_embeds, trig_mask, params)                # (B, S+T, V)
    return jnp.concatenate([tl[:, :P], tl[:, P + T:]], axis=1)     # drop triggers


# ---------------------------------------------------------------------------
# Deterministic synthetic parameters (stand-in for the pretrained checkpoint).
# ---------------------------------------------------------------------------
def init_params(key, vocab=64, hidden=32, ffn=64, trigger_num=6):
    ks = jax.random.split(key, 8)
    scale = 0.02
    f = lambda k, s: (scale * jax.random.normal(k, s, jnp.float32)).astype(jnp.bfloat16)
    vocab_p = _round_up(max(vocab, 128), 128)     # lane-dense LM-head output
    w_lm = f(ks[7], (hidden, vocab))
    return {
        "embed":   f(ks[0], (vocab, hidden)),
        "w_q":     f(ks[1], (hidden, hidden)),
        "w_k":     f(ks[2], (hidden, hidden)),
        "w_v":     f(ks[3], (hidden, hidden)),
        "w_o":     f(ks[4], (hidden, hidden)),
        "w_up":    f(ks[5], (hidden, ffn)),
        "w_down":  f(ks[6], (ffn, hidden)),
        "ln1_g":   jnp.ones((1, hidden), jnp.bfloat16),
        "ln1_b":   jnp.zeros((1, hidden), jnp.bfloat16),
        "ln2_g":   jnp.ones((1, hidden), jnp.bfloat16),
        "ln2_b":   jnp.zeros((1, hidden), jnp.bfloat16),
        "w_lm_p":  jnp.pad(w_lm, ((0, 0), (0, vocab_p - vocab))),
        # nn.Parameter(torch.zeros((trigger_num, hidden))) in the module
        "triggers": jnp.zeros((trigger_num, hidden), jnp.bfloat16),
    }


if __name__ == "__main__":
    key = jax.random.PRNGKey(0)
    B, S, H, V = 2, 8, 32, 64
    TRIG, INS = 6, 2

    params = init_params(key, vocab=V, hidden=H, ffn=2 * H, trigger_num=TRIG)

    kid, _ = jax.random.split(key)
    input_ids = jax.random.randint(kid, (B, S), 0, V, dtype=jnp.int32)
    attention_mask = jnp.ones((B, S), jnp.float32).at[1, -2:].set(0.0)  # pad tail of sample 1

    # default path (output_clean_logits=False): single triggered pass
    logits = actor_for_trigger_forward(params, input_ids, attention_mask,
                                       insert_pos=INS,
                                       assuming_trigger_num=TRIG,
                                       output_clean_logits=False)
    jax.block_until_ready(logits)
    assert logits.shape == (B, S, V), logits.shape
    assert logits.dtype == jnp.float32

    # merged clean+triggered pass in one launch
    logits2 = actor_for_trigger_forward(params, input_ids, attention_mask,
                                        insert_pos=INS,
                                        assuming_trigger_num=TRIG,
                                        output_clean_logits=True)
    jax.block_until_ready(logits2)
    assert logits2.shape == (2 * B, S, V), logits2.shape
    assert bool(jnp.allclose(logits2[B:], logits, atol=2e-3, rtol=2e-3))

    print("KERNEL_OK")
</pallas_src>

<mosaic_0001>
module attributes {stable_mosaic.version = 11 : i64} {
  func.func @_lm_kernel(%arg0: i32, %arg1: memref<32x32xbf16, #tpu.memory_space<vmem>>, %arg2: memref<2x1x16xf32, #tpu.memory_space<vmem>>, %arg3: memref<32x32xbf16, #tpu.memory_space<vmem>>, %arg4: memref<32x32xbf16, #tpu.memory_space<vmem>>, %arg5: memref<32x32xbf16, #tpu.memory_space<vmem>>, %arg6: memref<32x32xbf16, #tpu.memory_space<vmem>>, %arg7: memref<32x64xbf16, #tpu.memory_space<vmem>>, %arg8: memref<64x32xbf16, #tpu.memory_space<vmem>>, %arg9: memref<1x32xbf16, #tpu.memory_space<vmem>>, %arg10: memref<1x32xbf16, #tpu.memory_space<vmem>>, %arg11: memref<1x32xbf16, #tpu.memory_space<vmem>>, %arg12: memref<1x32xbf16, #tpu.memory_space<vmem>>, %arg13: memref<32x128xbf16, #tpu.memory_space<vmem>>, %arg14: memref<32x128xf32, #tpu.memory_space<vmem>>, %arg15: memref<32x32xf32, #tpu.memory_space<vmem>>) attributes {dimension_semantics = [#tpu.dimension_semantics<parallel>], iteration_bounds = array<i64: 1>, scalar_prefetch = 0 : i64, scratch_operands = 1 : i64, tpu.core_type = #tpu.core_type<tc>, window_params = [{transform_indices = @transform_0, window_bounds = array<i64: 32, 32>}, {transform_indices = @transform_1, window_bounds = array<i64: 2, 1, 16>}, {pipeline_mode = #tpu.pipeline_mode<synchronous>, transform_indices = @transform_2, window_bounds = array<i64: 32, 32>}, {pipeline_mode = #tpu.pipeline_mode<synchronous>, transform_indices = @transform_3, window_bounds = array<i64: 32, 32>}, {pipeline_mode = #tpu.pipeline_mode<synchronous>, transform_indices = @transform_4, window_bounds = array<i64: 32, 32>}, {pipeline_mode = #tpu.pipeline_mode<synchronous>, transform_indices = @transform_5, window_bounds = array<i64: 32, 32>}, {pipeline_mode = #tpu.pipeline_mode<synchronous>, transform_indices = @transform_6, window_bounds = array<i64: 32, 64>}, {pipeline_mode = #tpu.pipeline_mode<synchronous>, transform_indices = @transform_7, window_bounds = array<i64: 64, 32>}, {pipeline_mode = #tpu.pipeline_mode<synchronous>, transform_indices = @transform_8, window_bounds = array<i64: 1, 32>}, {pipeline_mode = #tpu.pipeline_mode<synchronous>, transform_indices = @transform_9, window_bounds = array<i64: 1, 32>}, {pipeline_mode = #tpu.pipeline_mode<synchronous>, transform_indices = @transform_10, window_bounds = array<i64: 1, 32>}, {pipeline_mode = #tpu.pipeline_mode<synchronous>, transform_indices = @transform_11, window_bounds = array<i64: 1, 32>}, {pipeline_mode = #tpu.pipeline_mode<synchronous>, transform_indices = @transform_12, window_bounds = array<i64: 32, 128>}, {transform_indices = @transform_13, window_bounds = array<i64: 32, 128>}]} {
    %c0 = arith.constant 0 : index
    %c0_0 = arith.constant 0 : index
    %0 = vector.load %arg1[%c0, %c0_0] : memref<32x32xbf16, #tpu.memory_space<vmem>>, vector<32x32xbf16>
    %1 = arith.extf %0 : vector<32x32xbf16> to vector<32x32xf32>
    %c0_1 = arith.constant 0 : index
    %c0_2 = arith.constant 0 : index
    %2 = vector.load %arg9[%c0_1, %c0_2] : memref<1x32xbf16, #tpu.memory_space<vmem>>, vector<1x32xbf16>
    %3 = arith.extf %2 : vector<1x32xbf16> to vector<1x32xf32>
    %c0_3 = arith.constant 0 : index
    %c0_4 = arith.constant 0 : index
    %4 = vector.load %arg10[%c0_3, %c0_4] : memref<1x32xbf16, #tpu.memory_space<vmem>>, vector<1x32xbf16>
    %5 = arith.extf %4 : vector<1x32xbf16> to vector<1x32xf32>
    %cst = arith.constant dense<0.000000e+00> : vector<32xf32>
    %6 = vector.multi_reduction <add>, %1, %cst [1] : vector<32x32xf32> to vector<32xf32>
    %7 = vector.shape_cast %6 : vector<32xf32> to vector<32x1xf32>
    %cst_5 = arith.constant 3.200000e+01 : f32
    %8 = vector.broadcast %cst_5 : f32 to vector<32x1xf32>
    %9 = arith.divf %7, %8 : vector<32x1xf32>
    %10 = vector.broadcast %9 : vector<32x1xf32> to vector<32x32xf32>
    %11 = arith.subf %1, %10 : vector<32x32xf32>
    %12 = arith.mulf %11, %11 : vector<32x32xf32>
    %cst_6 = arith.constant dense<0.000000e+00> : vector<32xf32>
    %13 = vector.multi_reduction <add>, %12, %cst_6 [1] : vector<32x32xf32> to vector<32xf32>
    %14 = vector.shape_cast %13 : vector<32xf32> to vector<32x1xf32>
    %cst_7 = arith.constant 3.200000e+01 : f32
    %15 = vector.broadcast %cst_7 : f32 to vector<32x1xf32>
    %16 = arith.divf %14, %15 : vector<32x1xf32>
    %17 = vector.broadcast %9 : vector<32x1xf32> to vector<32x32xf32>
    %18 = arith.subf %1, %17 : vector<32x32xf32>
    %cst_8 = arith.constant 9.99999974E-6 : f32
    %19 = vector.broadcast %cst_8 : f32 to vector<32x1xf32>
    %20 = arith.addf %16, %19 : vector<32x1xf32>
    %21 = math.rsqrt %20 : vector<32x1xf32>
    %22 = vector.broadcast %21 : vector<32x1xf32> to vector<32x32xf32>
    %23 = arith.mulf %18, %22 : vector<32x32xf32>
    %24 = vector.broadcast %3 : vector<1x32xf32> to vector<32x32xf32>
    %25 = arith.mulf %23, %24 : vector<32x32xf32>
    %26 = vector.broadcast %5 : vector<1x32xf32> to vector<32x32xf32>
    %27 = arith.addf %25, %26 : vector<32x32xf32>
    %28 = arith.truncf %27 : vector<32x32xf32> to vector<32x32xbf16>
    %c0_9 = arith.constant 0 : index
    %c0_10 = arith.constant 0 : index
    %29 = vector.load %arg3[%c0_9, %c0_10] : memref<32x32xbf16, #tpu.memory_space<vmem>>, vector<32x32xbf16>
    %cst_11 = arith.constant dense<0.000000e+00> : vector<32x32xf32>
    %30 = tpu.matmul %28, %29, %cst_11 {dimension_numbers = #tpu.dot_dimension_numbers<[1], [0], [0], [1], [0, 0, 1, 1], [], []>} : vector<32x32xbf16>, vector<32x32xbf16>, vector<32x32xf32> -> vector<32x32xf32>
    %cst_12 = arith.constant 0.176776692 : f32
    %31 = vector.broadcast %cst_12 : f32 to vector<32x32xf32>
    %32 = arith.mulf %30, %31 : vector<32x32xf32>
    %c0_13 = arith.constant 0 : index
    %c0_14 = arith.constant 0 : index
    %33 = vector.load %arg4[%c0_13, %c0_14] : memref<32x32xbf16, #tpu.memory_space<vmem>>, vector<32x32xbf16>
    %cst_15 = arith.constant dense<0.000000e+00> : vector<32x32xf32>
    %34 = tpu.matmul %28, %33, %cst_15 {dimension_numbers = #tpu.dot_dimension_numbers<[1], [0], [0], [1], [0, 0, 1, 1], [], []>} : vector<32x32xbf16>, vector<32x32xbf16>, vector<32x32xf32> -> vector<32x32xf32>
    %c0_16 = arith.constant 0 : index
    %c0_17 = arith.constant 0 : index
    %35 = vector.load %arg5[%c0_16, %c0_17] : memref<32x32xbf16, #tpu.memory_space<vmem>>, vector<32x32xbf16>
    %cst_18 = arith.constant dense<0.000000e+00> : vector<32x32xf32>
    %36 = tpu.matmul %28, %35, %cst_18 {dimension_numbers = #tpu.dot_dimension_numbers<[1], [0], [0], [1], [0, 0, 1, 1], [], []>} : vector<32x32xbf16>, vector<32x32xbf16>, vector<32x32xf32> -> vector<32x32xf32>
    %37 = arith.truncf %32 : vector<32x32xf32> to vector<32x32xbf16>
    %38 = arith.truncf %34 : vector<32x32xf32> to vector<32x32xbf16>
    %39 = arith.truncf %36 : vector<32x32xf32> to vector<32x32xbf16>
    %40 = tpu.iota {dimensions = array<i32: 0>} : vector<16x16xi32>
    %41 = tpu.iota {dimensions = array<i32: 1>} : vector<16x16xi32>
    %42 = arith.cmpi sle, %41, %40 : vector<16x16xi32>
    %c0_19 = arith.constant 0 : index
    %c0_20 = arith.constant 0 : index
    %c0_21 = arith.constant 0 : index
    %43 = vector.load %arg2[%c0_19, %c0_20, %c0_21] : memref<2x1x16xf32, #tpu.memory_space<vmem>>, vector<1x1x16xf32>
    %44 = vector.shape_cast %43 : vector<1x1x16xf32> to vector<1x16xf32>
    %cst_22 = arith.constant 5.000000e-01 : f32
    %45 = vector.broadcast %cst_22 : f32 to vector<1x16xf32>
    %46 = arith.cmpf ogt, %44, %45 : vector<1x16xf32>
    %47 = vector.broadcast %46 : vector<1x16xi1> to vector<16x16xi1>
    %48 = arith.andi %42, %47 : vector<16x16xi1>
    %49 = vector.extract_strided_slice %37 {offsets = [0, 0], sizes = [16, 32], strides = [1, 1]} : vector<32x32xbf16> to vector<16x32xbf16>
    %50 = vector.extract_strided_slice %38 {offsets = [0, 0], sizes = [16, 32], strides = [1, 1]} : vector<32x32xbf16> to vector<16x32xbf16>
    %cst_23 = arith.constant dense<0.000000e+00> : vector<16x16xf32>
    %51 = tpu.matmul %49, %50, %cst_23 {dimension_numbers = #tpu.dot_dimension_numbers<[1], [1], [0], [0], [0, 0, 1, 0], [], []>} : vector<16x32xbf16>, vector<16x32xbf16>, vector<16x16xf32> -> vector<16x16xf32>
    %cst_24 = arith.constant -1.000000e+30 : f32
    %52 = vector.broadcast %cst_24 : f32 to vector<16x16xf32>
    %53 = arith.select %48, %51, %52 : vector<16x16xi1>, vector<16x16xf32>
    %cst_25 = arith.constant dense<0xFF800000> : vector<16xf32>
    %54 = vector.multi_reduction <maximumf>, %53, %cst_25 [1] : vector<16x16xf32> to vector<16xf32>
    %55 = vector.shape_cast %54 : vector<16xf32> to vector<16x1xf32>
    %56 = vector.broadcast %55 : vector<16x1xf32> to vector<16x16xf32>
    %57 = arith.subf %53, %56 : vector<16x16xf32>
    %58 = math.exp %57 : vector<16x16xf32>
    %cst_26 = arith.constant dense<0.000000e+00> : vector<16xf32>
    %59 = vector.multi_reduction <add>, %58, %cst_26 [1] : vector<16x16xf32> to vector<16xf32>
    %60 = vector.shape_cast %59 : vector<16xf32> to vector<16x1xf32>
    %61 = tpu.reciprocal %60 {approx = true} : vector<16x1xf32> -> vector<16x1xf32>
    %62 = vector.broadcast %61 : vector<16x1xf32> to vector<16x16xf32>
    %63 = arith.mulf %58, %62 : vector<16x16xf32>
    %64 = arith.truncf %63 : vector<16x16xf32> to vector<16x16xbf16>
    %65 = vector.extract_strided_slice %39 {offsets = [0, 0], sizes = [16, 32], strides = [1, 1]} : vector<32x32xbf16> to vector<16x32xbf16>
    %cst_27 = arith.constant dense<0.000000e+00> : vector<16x32xf32>
    %66 = tpu.matmul %64, %65, %cst_27 {dimension_numbers = #tpu.dot_dimension_numbers<[1], [0], [0], [1], [0, 0, 1, 1], [], []>} : vector<16x16xbf16>, vector<16x32xbf16>, vector<16x32xf32> -> vector<16x32xf32>
    %c0_28 = arith.constant 0 : index
    %c0_29 = arith.constant 0 : index
    %67 = vector.load %arg15[%c0_28, %c0_29] : memref<32x32xf32, #tpu.memory_space<vmem>>, vector<16x32xf32>
    tpu.vector_store %arg15[%c0_28, %c0_29], %66 {strides = array<i32>} : memref<32x32xf32, #tpu.memory_space<vmem>>, vector<16x32xf32>,
    %c1 = arith.constant 1 : index
    %c0_30 = arith.constant 0 : index
    %c0_31 = arith.constant 0 : index
    %68 = vector.load %arg2[%c1, %c0_30, %c0_31] : memref<2x1x16xf32, #tpu.memory_space<vmem>>, vector<1x1x16xf32>
    %69 = vector.shape_cast %68 : vector<1x1x16xf32> to vector<1x16xf32>
    %cst_32 = arith.constant 5.000000e-01 : f32
    %70 = vector.broadcast %cst_32 : f32 to vector<1x16xf32>
    %71 = arith.cmpf ogt, %69, %70 : vector<1x16xf32>
    %72 = vector.broadcast %71 : vector<1x16xi1> to vector<16x16xi1>
    %73 = arith.andi %42, %72 : vector<16x16xi1>
    %74 = vector.extract_strided_slice %37 {offsets = [16, 0], sizes = [16, 32], strides = [1, 1]} : vector<32x32xbf16> to vector<16x32xbf16>
    %75 = vector.extract_strided_slice %38 {offsets = [16, 0], sizes = [16, 32], strides = [1, 1]} : vector<32x32xbf16> to vector<16x32xbf16>
    %cst_33 = arith.constant dense<0.000000e+00> : vector<16x16xf32>
    %76 = tpu.matmul %74, %75, %cst_33 {dimension_numbers = #tpu.dot_dimension_numbers<[1], [1], [0], [0], [0, 0, 1, 0], [], []>} : vector<16x32xbf16>, vector<16x32xbf16>, vector<16x16xf32> -> vector<16x16xf32>
    %cst_34 = arith.constant -1.000000e+30 : f32
    %77 = vector.broadcast %cst_34 : f32 to vector<16x16xf32>
    %78 = arith.select %73, %76, %77 : vector<16x16xi1>, vector<16x16xf32>
    %cst_35 = arith.constant dense<0xFF800000> : vector<16xf32>
    %79 = vector.multi_reduction <maximumf>, %78, %cst_35 [1] : vector<16x16xf32> to vector<16xf32>
    %80 = vector.shape_cast %79 : vector<16xf32> to vector<16x1xf32>
    %81 = vector.broadcast %80 : vector<16x1xf32> to vector<16x16xf32>
    %82 = arith.subf %78, %81 : vector<16x16xf32>
    %83 = math.exp %82 : vector<16x16xf32>
    %cst_36 = arith.constant dense<0.000000e+00> : vector<16xf32>
    %84 = vector.multi_reduction <add>, %83, %cst_36 [1] : vector<16x16xf32> to vector<16xf32>
    %85 = vector.shape_cast %84 : vector<16xf32> to vector<16x1xf32>
    %86 = tpu.reciprocal %85 {approx = true} : vector<16x1xf32> -> vector<16x1xf32>
    %87 = vector.broadcast %86 : vector<16x1xf32> to vector<16x16xf32>
    %88 = arith.mulf %83, %87 : vector<16x16xf32>
    %89 = arith.truncf %88 : vector<16x16xf32> to vector<16x16xbf16>
    %90 = vector.extract_strided_slice %39 {offsets = [16, 0], sizes = [16, 32], strides = [1, 1]} : vector<32x32xbf16> to vector<16x32xbf16>
    %cst_37 = arith.constant dense<0.000000e+00> : vector<16x32xf32>
    %91 = tpu.matmul %89, %90, %cst_37 {dimension_numbers = #tpu.dot_dimension_numbers<[1], [0], [0], [1], [0, 0, 1, 1], [], []>} : vector<16x16xbf16>, vector<16x32xbf16>, vector<16x32xf32> -> vector<16x32xf32>
    %c16 = arith.constant 16 : index
    %c0_38 = arith.constant 0 : index
    %92 = vector.load %arg15[%c16, %c0_38] : memref<32x32xf32, #tpu.memory_space<vmem>>, vector<16x32xf32>
    tpu.vector_store %arg15[%c16, %c0_38], %91 {strides = array<i32>} : memref<32x32xf32, #tpu.memory_space<vmem>>, vector<16x32xf32>,
    %c0_39 = arith.constant 0 : index
    %c0_40 = arith.constant 0 : index
    %93 = vector.load %arg15[%c0_39, %c0_40] : memref<32x32xf32, #tpu.memory_space<vmem>>, vector<32x32xf32>
    %94 = arith.truncf %93 : vector<32x32xf32> to vector<32x32xbf16>
    %c0_41 = arith.constant 0 : index
    %c0_42 = arith.constant 0 : index
    %95 = vector.load %arg6[%c0_41, %c0_42] : memref<32x32xbf16, #tpu.memory_space<vmem>>, vector<32x32xbf16>
    %cst_43 = arith.constant dense<0.000000e+00> : vector<32x32xf32>
    %96 = tpu.matmul %94, %95, %cst_43 {dimension_numbers = #tpu.dot_dimension_numbers<[1], [0], [0], [1], [0, 0, 1, 1], [], []>} : vector<32x32xbf16>, vector<32x32xbf16>, vector<32x32xf32> -> vector<32x32xf32>
    %97 = arith.addf %1, %96 : vector<32x32xf32>
    %c0_44 = arith.constant 0 : index
    %c0_45 = arith.constant 0 : index
    %98 = vector.load %arg11[%c0_44, %c0_45] : memref<1x32xbf16, #tpu.memory_space<vmem>>, vector<1x32xbf16>
    %99 = arith.extf %98 : vector<1x32xbf16> to vector<1x32xf32>
    %c0_46 = arith.constant 0 : index
    %c0_47 = arith.constant 0 : index
    %100 = vector.load %arg12[%c0_46, %c0_47] : memref<1x32xbf16, #tpu.memory_space<vmem>>, vector<1x32xbf16>
    %101 = arith.extf %100 : vector<1x32xbf16> to vector<1x32xf32>
    %cst_48 = arith.constant dense<0.000000e+00> : vector<32xf32>
    %102 = vector.multi_reduction <add>, %97, %cst_48 [1] : vector<32x32xf32> to vector<32xf32>
    %103 = vector.shape_cast %102 : vector<32xf32> to vector<32x1xf32>
    %cst_49 = arith.constant 3.200000e+01 : f32
    %104 = vector.broadcast %cst_49 : f32 to vector<32x1xf32>
    %105 = arith.divf %103, %104 : vector<32x1xf32>
    %106 = vector.broadcast %105 : vector<32x1xf32> to vector<32x32xf32>
    %107 = arith.subf %97, %106 : vector<32x32xf32>
    %108 = arith.mulf %107, %107 : vector<32x32xf32>
    %cst_50 = arith.constant dense<0.000000e+00> : vector<32xf32>
    %109 = vector.multi_reduction <add>, %108, %cst_50 [1] : vector<32x32xf32> to vector<32xf32>
    %110 = vector.shape_cast %109 : vector<32xf32> to vector<32x1xf32>
    %cst_51 = arith.constant 3.200000e+01 : f32
    %111 = vector.broadcast %cst_51 : f32 to vector<32x1xf32>
    %112 = arith.divf %110, %111 : vector<32x1xf32>
    %113 = vector.broadcast %105 : vector<32x1xf32> to vector<32x32xf32>
    %114 = arith.subf %97, %113 : vector<32x32xf32>
    %cst_52 = arith.constant 9.99999974E-6 : f32
    %115 = vector.broadcast %cst_52 : f32 to vector<32x1xf32>
    %116 = arith.addf %112, %115 : vector<32x1xf32>
    %117 = math.rsqrt %116 : vector<32x1xf32>
    %118 = vector.broadcast %117 : vector<32x1xf32> to vector<32x32xf32>
    %119 = arith.mulf %114, %118 : vector<32x32xf32>
    %120 = vector.broadcast %99 : vector<1x32xf32> to vector<32x32xf32>
    %121 = arith.mulf %119, %120 : vector<32x32xf32>
    %122 = vector.broadcast %101 : vector<1x32xf32> to vector<32x32xf32>
    %123 = arith.addf %121, %122 : vector<32x32xf32>
    %124 = arith.truncf %123 : vector<32x32xf32> to vector<32x32xbf16>
    %c0_53 = arith.constant 0 : index
    %c0_54 = arith.constant 0 : index
    %125 = vector.load %arg7[%c0_53, %c0_54] : memref<32x64xbf16, #tpu.memory_space<vmem>>, vector<32x64xbf16>
    %cst_55 = arith.constant dense<0.000000e+00> : vector<32x64xf32>
    %126 = tpu.matmul %124, %125, %cst_55 {dimension_numbers = #tpu.dot_dimension_numbers<[1], [0], [0], [1], [0, 0, 1, 1], [], []>} : vector<32x32xbf16>, vector<32x64xbf16>, vector<32x64xf32> -> vector<32x64xf32>
    %127 = arith.mulf %126, %126 : vector<32x64xf32>
    %128 = arith.mulf %126, %127 : vector<32x64xf32>
    %cst_56 = arith.constant 4.471500e-02 : f32
    %129 = vector.broadcast %cst_56 : f32 to vector<32x64xf32>
    %130 = arith.mulf %129, %128 : vector<32x64xf32>
    %131 = arith.addf %126, %130 : vector<32x64xf32>
    %cst_57 = arith.constant 0.797884583 : f32
    %132 = vector.broadcast %cst_57 : f32 to vector<32x64xf32>
    %133 = arith.mulf %132, %131 : vector<32x64xf32>
    %134 = math.tanh %133 : vector<32x64xf32>
    %cst_58 = arith.constant 1.000000e+00 : f32
    %135 = vector.broadcast %cst_58 : f32 to vector<32x64xf32>
    %136 = arith.addf %135, %134 : vector<32x64xf32>
    %cst_59 = arith.constant 5.000000e-01 : f32
    %137 = vector.broadcast %cst_59 : f32 to vector<32x64xf32>
    %138 = arith.mulf %137, %136 : vector<32x64xf32>
    %139 = arith.mulf %126, %138 : vector<32x64xf32>
    %140 = arith.truncf %139 : vector<32x64xf32> to vector<32x64xbf16>
    %c0_60 = arith.constant 0 : index
    %c0_61 = arith.constant 0 : index
    %141 = vector.load %arg8[%c0_60, %c0_61] : memref<64x32xbf16, #tpu.memory_space<vmem>>, vector<64x32xbf16>
    %cst_62 = arith.constant dense<0.000000e+00> : vector<32x32xf32>
    %142 = tpu.matmul %140, %141, %cst_62 {dimension_numbers = #tpu.dot_dimension_numbers<[1], [0], [0], [1], [0, 0, 1, 1], [], []>} : vector<32x64xbf16>, vector<64x32xbf16>, vector<32x32xf32> -> vector<32x32xf32>
    %143 = arith.addf %97, %142 : vector<32x32xf32>
    %144 = arith.truncf %143 : vector<32x32xf32> to vector<32x32xbf16>
    %c0_63 = arith.constant 0 : index
    %c0_64 = arith.constant 0 : index
    %145 = vector.load %arg13[%c0_63, %c0_64] : memref<32x128xbf16, #tpu.memory_space<vmem>>, vector<32x128xbf16>
    %cst_65 = arith.constant dense<0.000000e+00> : vector<32x128xf32>
    %146 = tpu.matmul %144, %145, %cst_65 {dimension_numbers = #tpu.dot_dimension_numbers<[1], [0], [0], [1], [0, 0, 1, 1], [], []>} : vector<32x32xbf16>, vector<32x128xbf16>, vector<32x128xf32> -> vector<32x128xf32>
    %c0_66 = arith.constant 0 : index
    %c0_67 = arith.constant 0 : index
    %147 = vector.load %arg14[%c0_66, %c0_67] : memref<32x128xf32, #tpu.memory_space<vmem>>, vector<32x128xf32>
    tpu.vector_store %arg14[%c0_66, %c0_67], %146 {strides = array<i32>} : memref<32x128xf32, #tpu.memory_space<vmem>>, vector<32x128xf32>,
    return
  }
  func.func @transform_0(%arg0: i32) -> (i32, i32) {
    %c0_i32 = arith.constant 0 : i32
    %c0_i32_0 = arith.constant 0 : i32
    return %arg0, %c0_i32 : i32, i32
  }
  func.func @transform_1(%arg0: i32) -> (i32, i32, i32) {
    %c0_i32 = arith.constant 0 : i32
    %c0_i32_0 = arith.constant 0 : i32
    %c0_i32_1 = arith.constant 0 : i32
    return %arg0, %c0_i32, %c0_i32_0 : i32, i32, i32
  }
  func.func @transform_2(%arg0: i32) -> (i32, i32) {
    %c0_i32 = arith.constant 0 : i32
    %c0_i32_0 = arith.constant 0 : i32
    %c0_i32_1 = arith.constant 0 : i32
    return %c0_i32, %c0_i32_0 : i32, i32
  }
  func.func @transform_3(%arg0: i32) -> (i32, i32) {
    %c0_i32 = arith.constant 0 : i32
    %c0_i32_0 = arith.constant 0 : i32
    %c0_i32_1 = arith.constant 0 : i32
    return %c0_i32, %c0_i32_0 : i32, i32
  }
  func.func @transform_4(%arg0: i32) -> (i32, i32) {
    %c0_i32 = arith.constant 0 : i32
    %c0_i32_0 = arith.constant 0 : i32
    %c0_i32_1 = arith.constant 0 : i32
    return %c0_i32, %c0_i32_0 : i32, i32
  }
  func.func @transform_5(%arg0: i32) -> (i32, i32) {
    %c0_i32 = arith.constant 0 : i32
    %c0_i32_0 = arith.constant 0 : i32
    %c0_i32_1 = arith.constant 0 : i32
    return %c0_i32, %c0_i32_0 : i32, i32
  }
  func.func @transform_6(%arg0: i32) -> (i32, i32) {
    %c0_i32 = arith.constant 0 : i32
    %c0_i32_0 = arith.constant 0 : i32
    %c0_i32_1 = arith.constant 0 : i32
    return %c0_i32, %c0_i32_0 : i32, i32
  }
  func.func @transform_7(%arg0: i32) -> (i32, i32) {
    %c0_i32 = arith.constant 0 : i32
    %c0_i32_0 = arith.constant 0 : i32
    %c0_i32_1 = arith.constant 0 : i32
    return %c0_i32, %c0_i32_0 : i32, i32
  }
  func.func @transform_8(%arg0: i32) -> (i32, i32) {
    %c0_i32 = arith.constant 0 : i32
    %c0_i32_0 = arith.constant 0 : i32
    %c0_i32_1 = arith.constant 0 : i32
    return %c0_i32, %c0_i32_0 : i32, i32
  }
  func.func @transform_9(%arg0: i32) -> (i32, i32) {
    %c0_i32 = arith.constant 0 : i32
    %c0_i32_0 = arith.constant 0 : i32
    %c0_i32_1 = arith.constant 0 : i32
    return %c0_i32, %c0_i32_0 : i32, i32
  }
  func.func @transform_10(%arg0: i32) -> (i32, i32) {
    %c0_i32 = arith.constant 0 : i32
    %c0_i32_0 = arith.constant 0 : i32
    %c0_i32_1 = arith.constant 0 : i32
    return %c0_i32, %c0_i32_0 : i32, i32
  }
  func.func @transform_11(%arg0: i32) -> (i32, i32) {
    %c0_i32 = arith.constant 0 : i32
    %c0_i32_0 = arith.constant 0 : i32
    %c0_i32_1 = arith.constant 0 : i32
    return %c0_i32, %c0_i32_0 : i32, i32
  }
  func.func @transform_12(%arg0: i32) -> (i32, i32) {
    %c0_i32 = arith.constant 0 : i32
    %c0_i32_0 = arith.constant 0 : i32
    %c0_i32_1 = arith.constant 0 : i32
    return %c0_i32, %c0_i32_0 : i32, i32
  }
  func.func @transform_13(%arg0: i32) -> (i32, i32) {
    %c0_i32 = arith.constant 0 : i32
    %c0_i32_0 = arith.constant 0 : i32
    return %arg0, %c0_i32 : i32, i32
  }
}

</mosaic_0001>

<bundles_post_ra>
// kernel: actor_for_trigger_forward.1
= control target key start
LH: loop header
LB: loop body
LE: loop exit
PB: predicated region body
PF: predicated region fallthrough
CT: control target
= control target key end

     0   :  { %vm57_vm0 = vcmask 261120   ;;  %v974_v10 = vmov 32.0   ;;  %s1276_s0 = inlined_call_operand.vmem [shape: bf16[32,32], index: 0, kind: input, shape index: {}]   ;;  %s1277_s2 = inlined_call_operand.vmem [shape: bf16[32,32], index: 2, kind: input, shape index: {}]   ;;  %s1278_s3 = inlined_call_operand.vmem [shape: bf16[32,32], index: 3, kind: input, shape index: {}]   ;;  %s1279_s4 = inlined_call_operand.vmem [shape: bf16[32,32], index: 4, kind: input, shape index: {}]   ;;  %s1280_s8 = inlined_call_operand.vmem [shape: bf16[1,32], index: 8, kind: input, shape index: {}]   ;;  %s1281_s9 = inlined_call_operand.vmem [shape: bf16[1,32], index: 9, kind: input, shape index: {}]   ;;  %s1282_s1 = inlined_call_operand.vmem [shape: f32[2,1,16], index: 1, kind: input, shape index: {}]   ;;  %s1283_s5 = inlined_call_operand.vmem [shape: bf16[32,32], index: 5, kind: input, shape index: {}]   ;;  %s1284_s6 = inlined_call_operand.vmem [shape: bf16[32,64], index: 6, kind: input, shape index: {}]   ;;  %s1285_s10 = inlined_call_operand.vmem [shape: bf16[1,32], index: 10, kind: input, shape index: {}]   ;;  %s1286_s11 = inlined_call_operand.vmem [shape: bf16[1,32], index: 11, kind: input, shape index: {}]   ;;  %s1287_s7 = inlined_call_operand.vmem [shape: bf16[64,32], index: 7, kind: input, shape index: {}]   ;;  %s1288_s12 = inlined_call_operand.vmem [shape: bf16[32,128], index: 12, kind: input, shape index: {}]   ;;  %s1289_s13 = inlined_call_operand.vmem [shape: f32[32,128], index: 13, kind: output, shape index: {}]  }
   0x1   :  { %v929_v0 = vld [vmem:[%s1276_s0 + $0x8] sm:$0xff]   ;;  %v922_v1 = vld [vmem:[%s1276_s0] sm:$0xff]   ;;  %932 = vrcp.f32 %v974_v10 }
   0x2   :  { %v1052_v2 = vunpack.c.l.bf16 %v929_v0  ;;  %v1054_v3 = vunpack.c.l.bf16 %v922_v1  ;;  %v1060_v6 = vunpack.c.h.bf16 %v929_v0  ;;  %v1062_v7 = vunpack.c.h.bf16 %v922_v1  ;;  %v906_v37 = vld [vmem:[%s1277_s2 + $0x8] sm:$0xff]  ;;  %v905_v43 = vld [vmem:[%s1277_s2] sm:$0xff] }
   0x3   :  { %v908_v38 = vld [vmem:[%s1278_s3 + $0x8] sm:$0xff]  ;;  %193 = vmatpush.bf16.msra.mxu0 %v906_v37  ;;  %v907_v44 = vld [vmem:[%s1278_s3] sm:$0xff] }
   0x4   :  { %v64_v4 = vsel %vm57_vm0, %v1052_v2, 0.0  ;;  %v58_v5 = vsel %vm57_vm0, %v1054_v3, 0.0  ;;  %v67_v8 = vsel %vm57_vm0, %v1060_v6, 0.0  ;;  %v61_v9 = vsel %vm57_vm0, %v1062_v7, 0.0  ;;  %v910_v39 = vld [vmem:[%s1279_s4 + $0x8] sm:$0xff]  ;;  %232 = vmatpush.bf16.msra.mxu1 %v908_v38  ;;  %v909_v45 = vld [vmem:[%s1279_s4] sm:$0xff] }
   0x5   :  { %65 = vadd.xlane.f32.xlu1 %v64_v4  ;;  %59 = vadd.xlane.f32.xlu0 %v58_v5  ;;  %v53_v5 = vld [vmem:[%s1280_s8] sm:$0x1] }
   0x6   :  { %267 = vmatpush.bf16.msra.mxu2 %v910_v39  ;;  %v54_v10 = vunpack.c.l.bf16 %v53_v5 }
   0x7   :  { %v933_v11 = vpop.eup %932  ;;  %194 = vmatpush.bf16.msra.mxu0 %v905_v43 }
   0x8   :  { %v71_v12 = vmul.f32 32.0, %v933_v11  ;;  %vm75_vm1 = vweird.f32 %v933_v11  ;;  %233 = vmatpush.bf16.msra.mxu1 %v907_v44 }
   0xa   :  { %v72_v13 = vsub.f32 1.0, %v71_v12  ;;  %268 = vmatpush.bf16.msra.mxu2 %v909_v45 }
   0xc   :  { %v73_v14 = vmul.f32 %v933_v11, %v72_v13 }
   0xd   :  { %68 = vadd.xlane.f32.xlu1 %v67_v8  ;;  %62 = vadd.xlane.f32.xlu0 %v61_v9 }
   0xe   :  { %v74_v15 = vadd.f32 %v933_v11, %v73_v14  ;;  %v55_v14 = vld [vmem:[%s1281_s9] sm:$0x1] }
  0x10   :  { %v1068_v16 = vsel %vm75_vm1, %v933_v11, %v74_v15 }
  0x78   :  { %v66_v17 = vpop.xlane.xlu1 %65  ;;  %v60_v18 = vpop.xlane.xlu0 %59 }
  0x79   :  { %v79_v19 = vmul.f32 %v1068_v16, %v66_v17  ;;  %v77_v20 = vmul.f32 %v1068_v16, %v60_v18 }
  0x7b   :  { %v1073_v21 = vsub.f32 %v1052_v2, %v79_v19  ;;  %v1076_v22 = vsub.f32 %v1054_v3, %v77_v20  ;;  %v56_v19 = vunpack.c.l.bf16 %v55_v14  ;;  %v153_v20 = vperm.slane %v54_v10, 0 }
  0x7d   :  { %v87_v23 = vmul.f32 %v1073_v21, %v1073_v21  ;;  %v85_v24 = vmul.f32 %v1076_v22, %v1076_v22 }
  0x7f   :  { %v95_v25 = vsel %vm57_vm0, %v87_v23, 0.0  ;;  %v89_v26 = vsel %vm57_vm0, %v85_v24, 0.0 }
  0x80   :  { %v69_v27 = vpop.xlane.xlu1 %68  ;;  %96 = vadd.xlane.f32.xlu0 %v95_v25  ;;  %90 = vadd.xlane.f32.xlu2 %v89_v26  ;;  %v63_v28 = vpop.xlane.xlu0 %62 }
  0x81   :  { %v80_v29 = vmul.f32 %v1068_v16, %v69_v27  ;;  %v78_v30 = vmul.f32 %v1068_v16, %v63_v28 }
  0x83   :  { %v1087_v31 = vsub.f32 %v1060_v6, %v80_v29  ;;  %v1090_v32 = vsub.f32 %v1062_v7, %v78_v30  ;;  %v158_v29 = vperm.slane %v56_v19, 0 }
  0x85   :  { %v88_v33 = vmul.f32 %v1087_v31, %v1087_v31  ;;  %v86_v34 = vmul.f32 %v1090_v32, %v1090_v32 }
  0x87   :  { %v98_v35 = vsel %vm57_vm0, %v88_v33, 0.0  ;;  %v92_v36 = vsel %vm57_vm0, %v86_v34, 0.0 }
  0x88   :  { %99 = vadd.xlane.f32.xlu1 %v98_v35  ;;  %93 = vadd.xlane.f32.xlu2 %v92_v36 }
  0xf3   :  { %v91_v40 = vpop.xlane.xlu2 %90  ;;  %v97_v42 = vpop.xlane.xlu0 %96 }
  0xf4   :  { %v101_v41 = vmul.f32 %v91_v40, %v1068_v16  ;;  %v103_v47 = vmul.f32 %v97_v42, %v1068_v16 }
  0xf6   :  { %v105_v46 = vadd.f32 1e-05, %v101_v41  ;;  %v107_v48 = vadd.f32 1e-05, %v103_v47 }
  0xf8   :  { %934 = vrsqrt.f32 %v105_v46  ;;  %vm115_vm3 = vweird.f32 %v105_v46  ;;  %vm135_vm10 = vweird.f32 %v107_v48 }
  0xf9   :  { %936 = vrsqrt.f32 %v107_v48 }
  0xfb   :  { %v100_v49 = vpop.xlane.xlu1 %99  ;;  %v94_v50 = vpop.xlane.xlu2 %93 }
  0xfc   :  { %v104_v51 = vmul.f32 %v100_v49, %v1068_v16  ;;  %v102_v52 = vmul.f32 %v94_v50, %v1068_v16 }
  0xfe   :  { %v935_v53 = vpop.eup %934  ;;  %v108_v54 = vadd.f32 1e-05, %v104_v51  ;;  %v106_v55 = vadd.f32 1e-05, %v102_v52 }
  0xff   :  { %v110_v56 = vmul.f32 %v935_v53, %v105_v46  ;;  %v937_v59 = vpop.eup %936  ;;  %vm116_vm2 = vweird.f32 %v935_v53 }
 0x100   :  { %938 = vrsqrt.f32 %v108_v54  ;;  %v130_v1 = vmul.f32 %v937_v59, %v107_v48  ;;  %vm117_vm4 = vmor %vm115_vm3, %vm116_vm2  ;;  %vm125_vm6 = vweird.f32 %v106_v55  ;;  %vm145_vm8 = vweird.f32 %v108_v54 }
 0x101   :  { %v111_v57 = vmul.f32 %v935_v53, %v110_v56  ;;  %940 = vrsqrt.f32 %v106_v55  ;;  %vm136_vm11 = vweird.f32 %v937_v59 }
 0x102   :  { %v131_v12 = vmul.f32 %v937_v59, %v130_v1  ;;  %vm137_vm13 = vmor %vm135_vm10, %vm136_vm11 }
 0x103   :  { %v112_v58 = vmul.f32 0.5, %v111_v57 }
 0x104   :  { %v132_v23 = vmul.f32 0.5, %v131_v12 }
 0x105   :  { %v113_v60 = vsub.f32 1.5, %v112_v58 }
 0x106   :  { %v939_v61 = vpop.eup %938  ;;  %v133_v30 = vsub.f32 1.5, %v132_v23 }
 0x107   :  { %v941_v62 = vpop.eup %940  ;;  %v140_v63 = vmul.f32 %v939_v61, %v108_v54  ;;  %v114_v0 = vmul.f32 %v935_v53, %v113_v60  ;;  %vm146_vm9 = vweird.f32 %v939_v61 }
 0x108   :  { %v120_v4 = vmul.f32 %v941_v62, %v106_v55  ;;  %vm126_vm5 = vweird.f32 %v941_v62  ;;  %vm147_vm12 = vmor %vm145_vm8, %vm146_vm9  ;;  %v134_v36 = vmul.f32 %v937_v59, %v133_v30 }
 0x109   :  { %v141_v8 = vmul.f32 %v939_v61, %v140_v63  ;;  %v118_v11 = vsel %vm117_vm4, %v935_v53, %v114_v0  ;;  %vm127_vm7 = vmor %vm125_vm6, %vm126_vm5  ;;  %vm338_vm4 = vcmask 130048  }
 0x10a   :  { %v121_v9 = vmul.f32 %v941_v62, %v120_v4  ;;  %v149_v18 = vmul.f32 %v118_v11, %v1076_v22 }
 0x10b   :  { %v142_v15 = vmul.f32 0.5, %v141_v8 }
 0x10c   :  { %v122_v13 = vmul.f32 0.5, %v121_v9  ;;  %v154_v28 = vmul.f32 %v153_v20, %v149_v18 }
 0x10d   :  { %v143_v25 = vsub.f32 1.5, %v142_v15 }
 0x10e   :  { %v123_v17 = vsub.f32 1.5, %v122_v13  ;;  %v159_v22 = vadd.f32 %v158_v29, %v154_v28 }
 0x10f   :  { %v144_v34 = vmul.f32 %v939_v61, %v143_v25 }
 0x110   :  { %v124_v24 = vmul.f32 %v941_v62, %v123_v17 }
 0x111   :  { %v148_v38 = vsel %vm147_vm12, %v939_v61, %v144_v34 }
 0x112   :  { %v128_v26 = vsel %vm127_vm7, %v941_v62, %v124_v24  ;;  %v152_v39 = vmul.f32 %v148_v38, %v1087_v31  ;;  %v975_v38 = vmov 0  }
 0x113   :  { %v150_v27 = vmul.f32 %v128_v26, %v1090_v32  ;;  %v138_v32 = vsel %vm137_vm13, %v937_v59, %v134_v36  ;;  %v299_v36 = vld [vmem:[%s1282_s1] sm:$0x1] }
 0x114   :  { %v151_v40 = vmul.f32 %v138_v32, %v1073_v21  ;;  %v157_v41 = vmul.f32 %v153_v20, %v152_v39  ;;  %vm300_vm14 = vcmp.gt.f32.partialorder %v299_v36, 0.5 }
 0x115   :  { %v155_v33 = vmul.f32 %v153_v20, %v150_v27  ;;  %v301_v32 = vsel %vm300_vm14, 1, %v975_v38 }
 0x116   :  { %v156_v42 = vmul.f32 %v153_v20, %v151_v40  ;;  %v162_v43 = vadd.f32 %v158_v29, %v157_v41  ;;  %v302_v41 = vperm.slane %v301_v32, 0 }
 0x117   :  { %v160_v35 = vadd.f32 %v158_v29, %v155_v33 }
 0x118   :  { %v161_v44 = vadd.f32 %v158_v29, %v156_v42  ;;  %v854_v42 = vld [vmem:[%s1282_s1 + $0x1] sm:$0x1]  ;;  %vm303_vm1 = vcmp.eq.s32.totalorder %v302_v41, 1 }
 0x119   :  { %v163_v37 = vpack.c.bf16 %v160_v35, %v159_v22  ;;  %vm389_vm2 = vcmp.gt.f32.partialorder %v854_v42, 0.5 }
 0x11a   :  { %v164_v45 = vpack.c.bf16 %v162_v43, %v161_v44  ;;  %v390_v43 = vsel %vm389_vm2, 1, %v975_v38 }
 0x11b   :  { %830 = vmatmul.msk.bf16.vlgmr.msra.gmra.mxu0 %vm57_vm0, %v163_v37  ;;  %840 = vmatmul.msk.bf16.vlgmr.msra.gmra.mxu1 %vm57_vm0, %v163_v37 }
 0x11c   :  { %850 = vmatmul.msk.bf16.vlgmr.msra.gmra.mxu2 %vm57_vm0, %v163_v37  ;;  %v292_v37 = vlaneseq }
 0x11e   :  { %v293_v39 = vshrl.u32 %v292_v37, 7  ;;  %v296_v40 = vand.u32 127, %v292_v37 }
 0x120   :  { %vm297_vm15 = vcmp.le.s32.totalorder %v296_v40, %v293_v39  ;;  %v294_v44 = vadd.s32 8, %v293_v39 }
 0x121   :  { %vm304_vm3 = vmand %vm297_vm15, %vm303_vm1 }
 0x122   :  { %vm298_vm5 = vcmp.le.s32.totalorder %v296_v40, %v294_v44 }
 0x123   :  { %vm305_vm7 = vmand %vm298_vm5, %vm303_vm1 }
 0x12b   :  { %831 = vmatmul.msk.bf16.gmra.mxu0 %vm57_vm0, %v164_v45  ;;  %841 = vmatmul.msk.bf16.gmra.mxu1 %vm57_vm0, %v164_v45 }
 0x12c   :  { %851 = vmatmul.msk.bf16.gmra.mxu2 %vm57_vm0, %v164_v45 }
 0x198   :  { %v196_v46 = vpop.f32.mrf.mxu0  ;;  %v235_v47 = vpop.f32.mrf.mxu1 }
 0x199   :  { %v284_v48 = vpack.c.bf16 %v235_v47, %v235_v47  ;;  %v206_v21 = vmul.f32 0.17677669, %v196_v46  ;;  %v391_v47 = vperm.slane %v390_v43, 0 }
 0x19b   :  { %v313_v53 = vunpack.c.l.b16 %v284_v48  ;;  %v280_v58 = vpack.c.bf16 %v206_v21, %v206_v21  ;;  %vm392_vm6 = vcmp.eq.s32.totalorder %v391_v47, 1 }
 0x19c   :  { %vm393_vm8 = vmand %vm297_vm15, %vm392_vm6 }
 0x19d   :  { %v308_v5 = vunpack.c.l.b16 %v280_v58  ;;  %vm394_vm9 = vmand %vm298_vm5, %vm392_vm6 }
 0x19f   :  { %v270_v49 = vpop.f32.mrf.mxu2 }
 0x1a0   :  { %v198_v50 = vpop.f32.mrf.mxu0  ;;  %v237_v51 = vpop.f32.mrf.mxu1  ;;  %v288_v57 = vpack.c.bf16 %v270_v49, %v270_v49 }
 0x1a1   :  { %v207_v31 = vmul.f32 0.17677669, %v198_v50  ;;  %v285_v52 = vpack.c.bf16 %v237_v51, %v237_v51 }
 0x1a2   :  { %v364_v1 = vunpack.c.l.b16 %v288_v57 }
 0x1a3   :  { %v314_v54 = vunpack.c.l.b16 %v285_v52  ;;  %v281_v55 = vpack.c.bf16 %v207_v31, %v207_v31 }
 0x1a5   :  { %v315_v56 = vpack.c.b16 %v314_v54, %v313_v53  ;;  %v309_v0 = vunpack.c.l.b16 %v281_v55 }
 0x1a7   :  { %v272_v59 = vpop.f32.mrf.mxu2  ;;  %v320_v60 = vsel %vm57_vm0, %v315_v56, 0  ;;  %v310_v9 = vpack.c.b16 %v309_v0, %v308_v5 }
 0x1a8   :  { %v289_v61 = vpack.c.bf16 %v272_v59, %v272_v59  ;;  %v201_v62 = vpop.f32.mrf.mxu0  ;;  %v240_v63 = vpop.f32.mrf.mxu1  ;;  %329 = vmatpush.bf16.xpose.msra.mxu3 %v320_v60 }
 0x1a9   :  { %v286_v10 = vpack.c.bf16 %v240_v63, %v240_v63  ;;  %v208_v17 = vmul.f32 0.17677669, %v201_v62 }
 0x1aa   :  { %v365_v4 = vunpack.c.l.b16 %v289_v61 }
 0x1ab   :  { %v402_v18 = vunpack.c.l.b16 %v286_v10  ;;  %v282_v25 = vpack.c.bf16 %v208_v17, %v208_v17 }
 0x1ac   :  { %v366_v8 = vpack.c.b16 %v365_v4, %v364_v1 }
 0x1ad   :  { %v397_v34 = vunpack.c.l.b16 %v282_v25 }
 0x1af   :  { %v275_v11 = vpop.f32.mrf.mxu2  ;;  %852 = vmatmul.msk.bf16.vlgmr.msra.gmra.mxu3 %vm57_vm0, %v310_v9 }
 0x1b0   :  { %378 = vmatpush.bf16.msrb.mxu3 %v366_v8  ;;  %v203_v12 = vpop.f32.mrf.mxu0  ;;  %v242_v13 = vpop.f32.mrf.mxu1  ;;  %v290_v24 = vpack.c.bf16 %v275_v11, %v275_v11 }
 0x1b1   :  { %v209_v14 = vmul.f32 0.17677669, %v203_v12  ;;  %v287_v15 = vpack.c.bf16 %v242_v13, %v242_v13 }
 0x1b2   :  { %v452_v30 = vunpack.c.l.b16 %v290_v24 }
 0x1b3   :  { %v403_v19 = vunpack.c.l.b16 %v287_v15  ;;  %v283_v20 = vpack.c.bf16 %v209_v14, %v209_v14 }
 0x1b5   :  { %v404_v23 = vpack.c.b16 %v403_v19, %v402_v18  ;;  %v398_v29 = vunpack.c.l.b16 %v283_v20 }
 0x1b7   :  { %v277_v26 = vpop.f32.mrf.mxu2  ;;  %v409_v27 = vsel %vm57_vm0, %v404_v23, 0  ;;  %v399_v35 = vpack.c.b16 %v398_v29, %v397_v34 }
 0x1b8   :  { %v291_v28 = vpack.c.bf16 %v277_v26, %v277_v26  ;;  %418 = vmatpush.bf16.xpose.msrb.mxu0 %v409_v27 }
 0x1ba   :  { %v453_v33 = vunpack.c.l.b16 %v291_v28 }
 0x1bc   :  { %v454_v22 = vpack.c.b16 %v453_v33, %v452_v30 }
 0x1be   :  { %466 = vmatpush.bf16.msrb.mxu1 %v454_v22  ;;  %v912_v22 = vld [vmem:[%s1283_s5 + $0x8] sm:$0xff] }
 0x1bf   :  { %855 = vmatmul.msk.bf16.vlgmr.msrb.gmra.mxu0 %vm57_vm0, %v399_v35  ;;  %509 = vmatpush.bf16.msrb.mxu2 %v912_v22  ;;  %v911_v35 = vld [vmem:[%s1283_s5] sm:$0xff] }
 0x1c3   :  { %510 = vmatpush.bf16.msrb.mxu2 %v911_v35 }
 0x232   :  { %v331_v45 = vpop.f32.mrf.mxu3 }
 0x233   :  { %v336_v46 = vsel %vm304_vm3, %v331_v45, -1e+30 }
 0x234   :  { %v339_v48 = vsel %vm338_vm4, %v336_v46, -inf }
 0x235   :  { %340 = vmax.xlane.f32.xlu2 %v339_v48 }
 0x23a   :  { %v333_v49 = vpop.f32.mrf.mxu3 }
 0x23b   :  { %v337_v50 = vsel %vm305_vm7, %v333_v49, -1e+30  ;;  %vm741_vm7 = vcmask 523264  }
 0x23c   :  { %v420_v51 = vpop.f32.mrf.mxu0  ;;  %v342_v31 = vsel %vm338_vm4, %v337_v50, -inf }
 0x23d   :  { %v425_v52 = vsel %vm393_vm8, %v420_v51, -1e+30  ;;  %343 = vmax.xlane.f32.xlu0 %v342_v31 }
 0x23e   :  { %v427_v21 = vsel %vm338_vm4, %v425_v52, -inf }
 0x23f   :  { %428 = vmax.xlane.f32.xlu1 %v427_v21 }
 0x244   :  { %v422_v53 = vpop.f32.mrf.mxu0 }
 0x245   :  { %v426_v54 = vsel %vm394_vm9, %v422_v53, -1e+30 }
 0x246   :  { %v430_v55 = vsel %vm338_vm4, %v426_v54, -inf }
 0x247   :  { %431 = vmax.xlane.f32.xlu2 %v430_v55 }
 0x2a8   :  { %v341_v56 = vpop.xlane.xlu2 %340 }
 0x2a9   :  { %v345_v57 = vsub.f32 %v336_v46, %v341_v56 }
 0x2ab   :  { %v347_v58 = vmul.f32 1.442695, %v345_v57 }
 0x2ad   :  { %942 = vpow2.f32 %v347_v58 }
 0x2b0   :  { %v344_v59 = vpop.xlane.xlu0 %343 }
 0x2b1   :  { %v346_v60 = vsub.f32 %v337_v50, %v344_v59 }
 0x2b2   :  { %v429_v61 = vpop.xlane.xlu1 %428 }
 0x2b3   :  { %v943_v62 = vpop.eup %942  ;;  %v349_v63 = vmul.f32 1.442695, %v346_v60  ;;  %v433_v0 = vsub.f32 %v425_v52, %v429_v61 }
 0x2b4   :  { %v351_v1 = vsel %vm338_vm4, %v943_v62, 0.0 }
 0x2b5   :  { %944 = vpow2.f32 %v349_v63  ;;  %v435_v4 = vmul.f32 1.442695, %v433_v0  ;;  %352 = vadd.xlane.f32.xlu0 %v351_v1 }
 0x2b7   :  { %946 = vpow2.f32 %v435_v4 }
 0x2ba   :  { %v432_v5 = vpop.xlane.xlu2 %431 }
 0x2bb   :  { %v945_v8 = vpop.eup %944  ;;  %v434_v9 = vsub.f32 %v426_v54, %v432_v5 }
 0x2bc   :  { %v354_v10 = vsel %vm338_vm4, %v945_v8, 0.0 }
 0x2bd   :  { %v947_v11 = vpop.eup %946  ;;  %v437_v12 = vmul.f32 1.442695, %v434_v9  ;;  %355 = vadd.xlane.f32.xlu1 %v354_v10 }
 0x2be   :  { %v439_v13 = vsel %vm338_vm4, %v947_v11, 0.0 }
 0x2bf   :  { %948 = vpow2.f32 %v437_v12  ;;  %440 = vadd.xlane.f32.xlu2 %v439_v13 }
 0x2c5   :  { %v949_v14 = vpop.eup %948 }
 0x2c6   :  { %v442_v15 = vsel %vm338_vm4, %v949_v14, 0.0 }
 0x2c7   :  { %443 = vadd.xlane.f32.xlu0 %v442_v15  ;;  %v913_v15 = vld [vmem:[%s1284_s6] sm:$0xff] }
 0x328   :  { %v353_v17 = vpop.xlane.xlu0 %352 }
 0x329   :  { %950 = vrcp.f32 %v353_v17 }
 0x32f   :  { %v951_v19 = vpop.eup %950 }
 0x330   :  { %v356_v18 = vpop.xlane.xlu1 %355  ;;  %v359_v24 = vmul.f32 %v951_v19, %v943_v62 }
 0x331   :  { %952 = vrcp.f32 %v356_v18 }
 0x332   :  { %v441_v20 = vpop.xlane.xlu2 %440 }
 0x333   :  { %954 = vrcp.f32 %v441_v20 }
 0x337   :  { %v953_v23 = vpop.eup %952 }
 0x338   :  { %v360_v25 = vmul.f32 %v953_v23, %v945_v8 }
 0x339   :  { %v955_v28 = vpop.eup %954 }
 0x33a   :  { %v444_v26 = vpop.xlane.xlu0 %443  ;;  %v361_v27 = vpack.c.bf16 %v360_v25, %v359_v24  ;;  %v447_v30 = vmul.f32 %v955_v28, %v947_v11  ;;  %v914_v11 = vld [vmem:[%s1284_s6 + $0x8] sm:$0xff] }
 0x33b   :  { %956 = vrcp.f32 %v444_v26  ;;  %658 = vmatpush.bf16.msra.mxu3 %v914_v11 }
 0x33c   :  { %853 = vmatmul.msk.bf16.vlgmr.msrb.gmra.mxu3 %vm338_vm4, %v361_v27 }
 0x33f   :  { %659 = vmatpush.bf16.msra.mxu3 %v913_v15  ;;  %v918_v15 = vld [vmem:[%s1287_s7 + $0x18] sm:$0xff] }
 0x340   :  { %752 = vmatpush.bf16.msra.mxu0 %v918_v15 }
 0x341   :  { %v957_v29 = vpop.eup %956 }
 0x342   :  { %v448_v33 = vmul.f32 %v957_v29, %v949_v14 }
 0x344   :  { %v449_v34 = vpack.c.bf16 %v448_v33, %v447_v30  ;;  %v526_v33 = vld [vmem:[%s1285_s10] sm:$0x1] }
 0x346   :  { %856 = vmatmul.msk.bf16.vlgmr.msrb.gmra.mxu1 %vm338_vm4, %v449_v34 }
 0x3bf   :  { %v380_v36 = vpop.f32.mrf.mxu3 }
 0x3c0   :  { %385 = vst.msk [vmem:[#allocation2] sm:$0xff] %vm57_vm0, %v380_v36  ;;  %v527_v36 = vunpack.c.l.bf16 %v526_v33 }
 0x3c3   :  { %v468_v37 = vpop.f32.mrf.mxu1 }
 0x3c4   :  { %473 = vst.msk [vmem:[#allocation2 + $0x10] sm:$0xff] %vm57_vm0, %v468_v37  ;;  %v528_v37 = vld [vmem:[%s1286_s11] sm:$0x1] }
 0x3c7   :  { %v382_v38 = vpop.f32.mrf.mxu3  ;;  %v475_v39 = vld [vmem:[#allocation2] sm:$0xff] }
 0x3c8   :  { %386 = vst.msk [vmem:[#allocation2 + $0x8] sm:$0xff] %vm57_vm0, %v382_v38 }
 0x3cb   :  { %v470_v32 = vpop.f32.mrf.mxu1  ;;  %v477_v43 = vld [vmem:[#allocation2 + $0x10] sm:$0xff] }
 0x3cc   :  { %474 = vst.msk [vmem:[#allocation2 + $0x18] sm:$0xff] %vm57_vm0, %v470_v32 }
 0x3cf   :  { %v476_v40 = vld [vmem:[#allocation2 + $0x8] sm:$0xff] }
 0x3d0   :  { %v479_v41 = vpack.c.bf16 %v476_v40, %v475_v39 }
 0x3d2   :  { %865 = vmatmul.msk.bf16.vlgmr.msrb.gmra.mxu2 %vm57_vm0, %v479_v41 }
 0x3d3   :  { %v478_v42 = vld [vmem:[#allocation2 + $0x18] sm:$0xff] }
 0x3d4   :  { %v480_v44 = vpack.c.bf16 %v478_v42, %v477_v43  ;;  %v529_v43 = vunpack.c.l.bf16 %v528_v37 }
 0x3e2   :  { %866 = vmatmul.msk.bf16.gmra.mxu2 %vm57_vm0, %v480_v44  ;;  %v618_v44 = vperm.slane %v527_v36, 0 }
 0x455   :  { %v512_v45 = vpop.f32.mrf.mxu2 }
 0x456   :  { %v1171_v46 = vadd.f32 %v1054_v3, %v512_v45 }
 0x458   :  { %v530_v47 = vsel %vm57_vm0, %v1171_v46, 0.0 }
 0x459   :  { %531 = vadd.xlane.f32.xlu1 %v530_v47 }
 0x45d   :  { %v514_v48 = vpop.f32.mrf.mxu2 }
 0x45e   :  { %v1176_v49 = vadd.f32 %v1062_v7, %v514_v48 }
 0x460   :  { %v533_v50 = vsel %vm57_vm0, %v1176_v49, 0.0 }
 0x461   :  { %534 = vadd.xlane.f32.xlu2 %v533_v50 }
 0x465   :  { %v517_v51 = vpop.f32.mrf.mxu2 }
 0x466   :  { %v1181_v31 = vadd.f32 %v1052_v2, %v517_v51 }
 0x468   :  { %v536_v3 = vsel %vm57_vm0, %v1181_v31, 0.0 }
 0x469   :  { %537 = vadd.xlane.f32.xlu0 %v536_v3 }
 0x46d   :  { %v519_v52 = vpop.f32.mrf.mxu2 }
 0x46e   :  { %v1186_v21 = vadd.f32 %v1060_v6, %v519_v52  ;;  %v623_v52 = vperm.slane %v529_v43, 0 }
 0x470   :  { %v539_v7 = vsel %vm57_vm0, %v1186_v21, 0.0 }
 0x471   :  { %540 = vadd.xlane.f32.xlu1 %v539_v7 }
 0x4cc   :  { %v532_v53 = vpop.xlane.xlu1 %531 }
 0x4cd   :  { %v542_v54 = vmul.f32 %v532_v53, %v1068_v16 }
 0x4cf   :  { %v1192_v55 = vsub.f32 %v1171_v46, %v542_v54 }
 0x4d1   :  { %v550_v2 = vmul.f32 %v1192_v55, %v1192_v55 }
 0x4d3   :  { %v554_v56 = vsel %vm57_vm0, %v550_v2, 0.0 }
 0x4d4   :  { %555 = vadd.xlane.f32.xlu2 %v554_v56  ;;  %v535_v57 = vpop.xlane.xlu2 %534 }
 0x4d5   :  { %v543_v6 = vmul.f32 %v535_v57, %v1068_v16 }
 0x4d7   :  { %v1199_v58 = vsub.f32 %v1176_v49, %v543_v6 }
 0x4d9   :  { %v551_v59 = vmul.f32 %v1199_v58, %v1199_v58 }
 0x4db   :  { %v557_v60 = vsel %vm57_vm0, %v551_v59, 0.0 }
 0x4dc   :  { %558 = vadd.xlane.f32.xlu0 %v557_v60  ;;  %v538_v61 = vpop.xlane.xlu0 %537 }
 0x4dd   :  { %v544_v62 = vmul.f32 %v538_v61, %v1068_v16 }
 0x4df   :  { %v1206_v63 = vsub.f32 %v1181_v31, %v544_v62 }
 0x4e1   :  { %v552_v0 = vmul.f32 %v1206_v63, %v1206_v63 }
 0x4e3   :  { %v560_v1 = vsel %vm57_vm0, %v552_v0, 0.0 }
 0x4e4   :  { %561 = vadd.xlane.f32.xlu1 %v560_v1  ;;  %v541_v4 = vpop.xlane.xlu1 %540 }
 0x4e5   :  { %v545_v5 = vmul.f32 %v541_v4, %v1068_v16 }
 0x4e7   :  { %v1213_v8 = vsub.f32 %v1186_v21, %v545_v5 }
 0x4e9   :  { %v553_v9 = vmul.f32 %v1213_v8, %v1213_v8 }
 0x4eb   :  { %v563_v10 = vsel %vm57_vm0, %v553_v9, 0.0 }
 0x4ec   :  { %564 = vadd.xlane.f32.xlu2 %v563_v10 }
 0x547   :  { %v556_v12 = vpop.xlane.xlu2 %555 }
 0x548   :  { %v566_v13 = vmul.f32 %v556_v12, %v1068_v16 }
 0x54a   :  { %v570_v14 = vadd.f32 1e-05, %v566_v13 }
 0x54c   :  { %958 = vrsqrt.f32 %v570_v14  ;;  %vm580_vm11 = vweird.f32 %v570_v14 }
 0x54f   :  { %v559_v17 = vpop.xlane.xlu0 %558 }
 0x550   :  { %v567_v18 = vmul.f32 %v559_v17, %v1068_v16  ;;  %v915_v17 = vld [vmem:[%s1287_s7] sm:$0xff] }
 0x552   :  { %v959_v19 = vpop.eup %958  ;;  %v571_v20 = vadd.f32 1e-05, %v567_v18 }
 0x553   :  { %v575_v23 = vmul.f32 %v959_v19, %v570_v14  ;;  %vm581_vm10 = vweird.f32 %v959_v19 }
 0x554   :  { %960 = vrsqrt.f32 %v571_v20  ;;  %vm582_vm12 = vmor %vm580_vm11, %vm581_vm10  ;;  %vm590_vm14 = vweird.f32 %v571_v20 }
 0x555   :  { %v576_v24 = vmul.f32 %v959_v19, %v575_v23 }
 0x557   :  { %v577_v25 = vmul.f32 0.5, %v576_v24  ;;  %v562_v26 = vpop.xlane.xlu1 %561 }
 0x558   :  { %v568_v27 = vmul.f32 %v562_v26, %v1068_v16 }
 0x559   :  { %v578_v28 = vsub.f32 1.5, %v577_v25 }
 0x55a   :  { %v961_v29 = vpop.eup %960  ;;  %v572_v30 = vadd.f32 1e-05, %v568_v27 }
 0x55b   :  { %v579_v34 = vmul.f32 %v959_v19, %v578_v28  ;;  %v585_v22 = vmul.f32 %v961_v29, %v571_v20  ;;  %vm591_vm13 = vweird.f32 %v961_v29 }
 0x55c   :  { %962 = vrsqrt.f32 %v572_v30  ;;  %vm592_vm15 = vmor %vm590_vm14, %vm591_vm13  ;;  %vm600_vm2 = vweird.f32 %v572_v30 }
 0x55d   :  { %v586_v35 = vmul.f32 %v961_v29, %v585_v22  ;;  %v583_v38 = vsel %vm582_vm12, %v959_v19, %v579_v34 }
 0x55e   :  { %v614_v45 = vmul.f32 %v583_v38, %v1192_v55 }
 0x55f   :  { %v587_v32 = vmul.f32 0.5, %v586_v35  ;;  %v565_v39 = vpop.xlane.xlu2 %564 }
 0x560   :  { %v569_v40 = vmul.f32 %v565_v39, %v1068_v16  ;;  %v619_v7 = vmul.f32 %v618_v44, %v614_v45 }
 0x561   :  { %v588_v41 = vsub.f32 1.5, %v587_v32 }
 0x562   :  { %v963_v42 = vpop.eup %962  ;;  %v573_v47 = vadd.f32 1e-05, %v569_v40  ;;  %v624_v57 = vadd.f32 %v623_v52, %v619_v7 }
 0x563   :  { %v589_v48 = vmul.f32 %v961_v29, %v588_v41  ;;  %v595_v50 = vmul.f32 %v963_v42, %v572_v30  ;;  %vm601_vm1 = vweird.f32 %v963_v42 }
 0x564   :  { %964 = vrsqrt.f32 %v573_v47  ;;  %vm602_vm3 = vmor %vm600_vm2, %vm601_vm1  ;;  %vm610_vm5 = vweird.f32 %v573_v47 }
 0x565   :  { %v593_v51 = vsel %vm592_vm15, %v961_v29, %v589_v48  ;;  %v596_v3 = vmul.f32 %v963_v42, %v595_v50 }
 0x566   :  { %v615_v53 = vmul.f32 %v593_v51, %v1199_v58 }
 0x567   :  { %v597_v16 = vmul.f32 0.5, %v596_v3 }
 0x568   :  { %v620_v54 = vmul.f32 %v618_v44, %v615_v53 }
 0x569   :  { %v598_v2 = vsub.f32 1.5, %v597_v16 }
 0x56a   :  { %v965_v56 = vpop.eup %964  ;;  %v625_v6 = vadd.f32 %v623_v52, %v620_v54 }
 0x56b   :  { %v599_v59 = vmul.f32 %v963_v42, %v598_v2  ;;  %v605_v55 = vmul.f32 %v965_v56, %v573_v47  ;;  %vm611_vm4 = vweird.f32 %v965_v56 }
 0x56c   :  { %v628_v60 = vpack.c.bf16 %v625_v6, %v624_v57  ;;  %vm612_vm6 = vmor %vm610_vm5, %vm611_vm4 }
 0x56d   :  { %v606_v61 = vmul.f32 %v965_v56, %v605_v55  ;;  %v603_v62 = vsel %vm602_vm3, %v963_v42, %v599_v59 }
 0x56e   :  { %875 = vmatmul.msk.bf16.vlgmr.msra.gmra.mxu3 %vm57_vm0, %v628_v60  ;;  %v616_v58 = vmul.f32 %v603_v62, %v1206_v63  ;;  %v917_v63 = vld [vmem:[%s1287_s7 + $0x10] sm:$0xff]  ;;  %v920_v60 = vld [vmem:[%s1288_s12 + $0x8] sm:$0xff] }
 0x56f   :  { %v607_v0 = vmul.f32 0.5, %v606_v61  ;;  %753 = vmatpush.bf16.msra.mxu0 %v917_v63  ;;  %801 = vmatpush.bf16.msra.mxu1 %v920_v60  ;;  %v919_v61 = vld [vmem:[%s1288_s12] sm:$0xff] }
 0x570   :  { %v621_v10 = vmul.f32 %v618_v44, %v616_v58 }
 0x571   :  { %v608_v1 = vsub.f32 1.5, %v607_v0 }
 0x572   :  { %v626_v12 = vadd.f32 %v623_v52, %v621_v10 }
 0x573   :  { %v609_v4 = vmul.f32 %v965_v56, %v608_v1  ;;  %802 = vmatpush.bf16.msra.mxu1 %v919_v61 }
 0x575   :  { %v613_v5 = vsel %vm612_vm6, %v965_v56, %v609_v4 }
 0x576   :  { %v617_v9 = vmul.f32 %v613_v5, %v1213_v8  ;;  %v916_v8 = vld [vmem:[%s1287_s7 + $0x8] sm:$0xff] }
 0x577   :  { %754 = vmatpush.bf16.msra.mxu0 %v916_v8 }
 0x578   :  { %v622_v11 = vmul.f32 %v618_v44, %v617_v9 }
 0x57a   :  { %v627_v13 = vadd.f32 %v623_v52, %v622_v11 }
 0x57b   :  { %755 = vmatpush.bf16.msra.mxu0 %v915_v17 }
 0x57c   :  { %v629_v14 = vpack.c.bf16 %v627_v13, %v626_v12 }
 0x57e   :  { %876 = vmatmul.msk.bf16.gmra.mxu3 %vm57_vm0, %v629_v14 }
 0x5f1   :  { %v661_v18 = vpop.f32.mrf.mxu3 }
 0x5f2   :  { %v671_v19 = vmul.f32 %v661_v18, %v661_v18 }
 0x5f4   :  { %v675_v20 = vmul.f32 %v671_v19, %v661_v18 }
 0x5f6   :  { %v679_v23 = vmul.f32 0.044715, %v675_v20 }
 0x5f8   :  { %v683_v24 = vadd.f32 %v679_v23, %v661_v18 }
 0x5f9   :  { %v663_v25 = vpop.f32.mrf.mxu3 }
 0x5fa   :  { %v687_v26 = vmul.f32 0.7978846, %v683_v24  ;;  %v672_v27 = vmul.f32 %v663_v25, %v663_v25 }
 0x5fc   :  { %v676_v28 = vmul.f32 %v672_v27, %v663_v25  ;;  %966 = vtanh.f32 %v687_v26 }
 0x5fe   :  { %v680_v29 = vmul.f32 0.044715, %v676_v28 }
 0x600   :  { %v684_v30 = vadd.f32 %v680_v29, %v663_v25 }
 0x601   :  { %v666_v33 = vpop.f32.mrf.mxu3 }
 0x602   :  { %v688_v34 = vmul.f32 0.7978846, %v684_v30  ;;  %v673_v22 = vmul.f32 %v666_v33, %v666_v33  ;;  %v967_v35 = vpop.eup %966 }
 0x603   :  { %v695_v38 = vadd.f32 1.0, %v967_v35 }
 0x604   :  { %968 = vtanh.f32 %v688_v34  ;;  %v677_v36 = vmul.f32 %v673_v22, %v666_v33 }
 0x605   :  { %v699_v43 = vmul.f32 0.5, %v695_v38 }
 0x606   :  { %v681_v37 = vmul.f32 0.044715, %v677_v36 }
 0x607   :  { %v703_v50 = vmul.f32 %v699_v43, %v661_v18 }
 0x608   :  { %v685_v32 = vadd.f32 %v681_v37, %v666_v33 }
 0x609   :  { %v668_v39 = vpop.f32.mrf.mxu3 }
 0x60a   :  { %v969_v40 = vpop.eup %968  ;;  %v689_v41 = vmul.f32 0.7978846, %v685_v32  ;;  %v674_v42 = vmul.f32 %v668_v39, %v668_v39 }
 0x60b   :  { %v696_v44 = vadd.f32 1.0, %v969_v40 }
 0x60c   :  { %v678_v45 = vmul.f32 %v674_v42, %v668_v39  ;;  %970 = vtanh.f32 %v689_v41 }
 0x60d   :  { %v700_v47 = vmul.f32 0.5, %v696_v44 }
 0x60e   :  { %v682_v48 = vmul.f32 0.044715, %v678_v45 }
 0x60f   :  { %v704_v51 = vmul.f32 %v700_v47, %v663_v25 }
 0x610   :  { %v686_v3 = vadd.f32 %v682_v48, %v668_v39 }
 0x611   :  { %v707_v52 = vpack.c.bf16 %v704_v51, %v703_v50 }
 0x612   :  { %v690_v7 = vmul.f32 0.7978846, %v686_v3  ;;  %v971_v53 = vpop.eup %970 }
 0x613   :  { %893 = vmatmul.msk.bf16.vlgmr.msra.gmra.mxu0 %vm741_vm7, %v707_v52  ;;  %v697_v16 = vadd.f32 1.0, %v971_v53 }
 0x614   :  { %972 = vtanh.f32 %v690_v7 }
 0x615   :  { %v701_v2 = vmul.f32 0.5, %v697_v16 }
 0x617   :  { %v705_v6 = vmul.f32 %v701_v2, %v666_v33 }
 0x61a   :  { %v973_v54 = vpop.eup %972 }
 0x61b   :  { %v698_v56 = vadd.f32 1.0, %v973_v54 }
 0x61d   :  { %v702_v57 = vmul.f32 0.5, %v698_v56 }
 0x61f   :  { %v706_v59 = vmul.f32 %v702_v57, %v668_v39 }
 0x621   :  { %v708_v55 = vpack.c.bf16 %v706_v59, %v705_v6 }
 0x623   :  { %894 = vmatmul.msk.bf16.gmra.mxu0 %vm741_vm7, %v708_v55 }
 0x690   :  { %v757_v62 = vpop.f32.mrf.mxu0 }
 0x691   :  { %v767_v1 = vadd.f32 %v757_v62, %v1171_v46 }
 0x698   :  { %v759_v0 = vpop.f32.mrf.mxu0 }
 0x699   :  { %v768_v58 = vadd.f32 %v759_v0, %v1176_v49 }
 0x69b   :  { %v771_v4 = vpack.c.bf16 %v768_v58, %v767_v1 }
 0x69d   :  { %903 = vmatmul.msk.bf16.vlgmr.msra.gmra.mxu1 %vm57_vm0, %v771_v4 }
 0x6a0   :  { %v762_v5 = vpop.f32.mrf.mxu0 }
 0x6a1   :  { %v769_v10 = vadd.f32 %v762_v5, %v1181_v31 }
 0x6a8   :  { %v764_v9 = vpop.f32.mrf.mxu0 }
 0x6a9   :  { %v770_v11 = vadd.f32 %v764_v9, %v1186_v21 }
 0x6ab   :  { %v772_v12 = vpack.c.bf16 %v770_v11, %v769_v10 }
 0x6ad   :  { %904 = vmatmul.msk.bf16.gmra.mxu1 %vm57_vm0, %v772_v12 }
 0x71a   :  { %v804_v13 = vpop.f32.mrf.mxu1 }
 0x71b   :  { %814 = vst [vmem:[%s1289_s13] sm:$0xff] %v804_v13 }
 0x722   :  { %v806_v46 = vpop.f32.mrf.mxu1 }
 0x723   :  { %815 = vst [vmem:[%s1289_s13 + $0x8] sm:$0xff] %v806_v46 }
 0x72a   :  { %v809_v49 = vpop.f32.mrf.mxu1 }
 0x72b   :  { %816 = vst [vmem:[%s1289_s13 + $0x10] sm:$0xff] %v809_v49 }
 0x732   :  { %v811_v31 = vpop.f32.mrf.mxu1 }
 0x733   :  { %817 = vst [vmem:[%s1289_s13 + $0x18] sm:$0xff] %v811_v31 }

</bundles_post_ra>
